<compile_context>
chip_gen: v5e
topology: v5e:2x2
jax: 0.10.0
libtpu: 0.0.40
codegen_flags: <defaults>
</compile_context>

<pallas_src>
import math

import jax
import jax.numpy as jnp
from jax.experimental import pallas as pl
from jax.experimental.pallas import tpu as pltpu


def _round_up(x, m):
    return (x + m - 1) // m * m


# --------------------------------------------------------------------------
# kernel
# --------------------------------------------------------------------------
def _downsample_kernel(xi_ref, xh_ref, wa_ref, wb_ref, wc_ref, wd_ref, b_ref,
                       o_ref):
    """One (batch, row-tile) step of Conv2d(k=3, s=2, p=1).

    Layout: xi row (p*Q + q) holds, for output position (p, q), the four
    "unshifted" taps as 4C channels:
        [0 :C ] = padded(2p  , 2q+1)   (xe_rx1)
        [C :2C] = padded(2p  , 2q  )   (xe_rx0)
        [2C:3C] = padded(2p+1, 2q  )   (xo_rx0)
        [3C:4C] = padded(2p+1, 2q+1)   (xo_rx1)

    xi_ref : (M = TH*Q, 4C)  this tile's rows
    xh_ref : (Q, 4C)         halo: row p = (t+1)*TH (only its xe half is used)
    wa_ref : (4C, Co)        [wt01; wt00; wt10; wt11]   (ky<2, kx<2)
    wb_ref : (2C, Co)        [wt02; wt12]               (ky<2, kx=2, +1 pair)
    wc_ref : (2C, Co)        [wt21; wt20]               (ky=2, kx<2, +Q rows)
    wd_ref : ( C, Co)        wt22                       (ky=2, kx=2, +Q+1)
    b_ref  : (1, Co) f32     bias
    o_ref  : (M, Co)         output tile (channels-last, q padded to Q)
    """
    M, C4 = xi_ref.shape
    C = C4 // 4
    Q = xh_ref.shape[0]
    f32 = jnp.float32

    x = xi_ref[...]                                     # (M, 4C)

    # Source rows shifted by +Q (the ky=2 taps), xe channels only.  Both
    # pieces are sublane-pack aligned (Q, M-Q multiples of the pack).
    if M > Q:
        ecat = jnp.concatenate([xi_ref[Q:, :2 * C], xh_ref[:, :2 * C]], axis=0)
    else:
        ecat = xh_ref[:, :2 * C]                        # TH == 1 tile

    def mm(lhs, w_ref):
        return jnp.dot(lhs, w_ref[...], preferred_element_type=f32)

    # Taps that need no column-pair shift: ky in {0,1}, kx in {0,1}  (K=4C)
    # plus ky=2, kx in {0,1} from the +Q rows                        (K=2C).
    unshifted = mm(x, wa_ref) + mm(ecat, wc_ref) + b_ref[...]

    # Taps that need column pair q+1: ky in {0,1}, kx=2 (K=2C) and
    # ky=2, kx=2 from the +Q rows (K=C).  Summed first, shifted once.
    shifted = mm(x[:, C:3 * C], wb_ref) + mm(ecat[:, C:], wd_ref)

    # out[m] += shifted[m+1]:  roll by M-1 == roll by -1 (np.roll semantics).
    # The wrapped row lands only in column q = Q-1 >= Wo, which the wrapper
    # discards — no mask needed (XLU slot, fully aligned store).
    o_ref[...] = (unshifted
                  + pltpu.roll(shifted, shift=M - 1, axis=0)).astype(o_ref.dtype)


# --------------------------------------------------------------------------
# tiling / VMEM heuristics
# --------------------------------------------------------------------------
def _tpu_vmem_capacity():
    """Per-core VMEM capacity; conservative (v7x-safe) fallback."""
    default = 64 * 1024 * 1024
    try:
        info = pltpu.get_tpu_info()
        cap = getattr(info, "vmem_capacity_bytes", None)
        return int(cap) if cap else default
    except Exception:
        return default


def _step_vmem_bytes(m_rows, Q, C, Co, in_sz, out_sz):
    """Rough per-grid-step VMEM working set."""
    inp = 2 * m_rows * 4 * C * in_sz           # xi block, double buffered
    halo = 2 * Q * 4 * C * in_sz               # halo block, double buffered
    wts = 2 * 9 * C * Co * in_sz + 2 * Co * 4  # resident weights + bias
    outb = 2 * m_rows * Co * out_sz            # output block, double buffered
    ecat = m_rows * 2 * C * in_sz              # in-kernel concat temp
    tmps = 3 * m_rows * Co * 4                 # f32 matmul / roll temps
    return inp + halo + wts + outb + ecat + tmps


def _pick_row_tile(N, Ho, Q, C, Co, in_sz, out_sz, vmem_budget, target_rows):
    """Largest divisor TH of Ho that fits the VMEM budget, keeps >= 4 grid
    steps (pipeline / both v7x cores fed), and stops growing once a step
    carries >= target_rows output positions."""
    min_steps = 4 if N * Ho >= 4 else 1
    best = 1
    for th in range(1, Ho + 1):
        if Ho % th:
            continue
        if _step_vmem_bytes(th * Q, Q, C, Co, in_sz, out_sz) > vmem_budget:
            break
        if N * (Ho // th) < min_steps:
            break
        best = th
        if th * Q >= target_rows:
            break
    return best
    # TODO(synk): add a non-divisor TH (remainder tile via pl.when) and an
    # output-channel grid axis for very large C*Co (>~1/3 of VMEM on v7x).


# --------------------------------------------------------------------------
# forward
# --------------------------------------------------------------------------
def downsample_forward_nhwc(x_nhwc, weight, bias, *, compute_dtype=None,
                            interpret=False):
    """Conv2d(dim, dim, 3, stride=2, padding=1) on an NHWC tensor -> NHWC."""
    N, H, W, C = x_nhwc.shape
    Co = weight.shape[0]
    Ho, Wo = (H + 1) // 2, (W + 1) // 2

    cdt = jnp.dtype(compute_dtype) if compute_dtype is not None else x_nhwc.dtype
    in_sz = jnp.dtype(cdt).itemsize
    out_sz = jnp.dtype(x_nhwc.dtype).itemsize

    # Column pairs per row, aligned to the sublane pack of the compute dtype
    # (8 for f32, 16 for bf16, 32 for int8/fp8) so every row offset that the
    # kernel uses (Q, M-Q) is tile-aligned.
    pack = {4: 8, 2: 16, 1: 32}.get(in_sz, 8)
    Q = _round_up(Wo + 1, pack)
    # The kx=2 wrap at q = Q-1 (and the pair-Wo read at q = Wo-1) rely on
    # Q >= Wo + 1: pair Wo must exist and column Q-1 must be discarded.
    assert Q >= Wo + 1

    xc = x_nhwc.astype(cdt)

    # ---- glue (XLA: two pad/slice fusions + one interleave, ~1x input) -----
    # Even padded rows (2p) are the odd original rows with a zero row on top;
    # odd padded rows (2p+1) are the even original rows (one zero p-row of
    # bottom padding, never read).  The W axis is zero-padded to 2*Q columns.
    xe4 = jnp.pad(xc[:, 1::2],
                  ((0, 0), (1, Ho - H // 2), (1, 2 * Q - W - 1), (0, 0)))
    xo4 = jnp.pad(xc[:, 0::2],
                  ((0, 0), (0, 1), (1, 2 * Q - W - 1), (0, 0)))
    xe4 = xe4.reshape(N, Ho + 1, Q, 2, C)      # axis 3 = column parity rx
    xo4 = xo4.reshape(N, Ho + 1, Q, 2, C)
    # channel order per pair: [xe_rx1 | xe_rx0 | xo_rx0 | xo_rx1]
    xi = jnp.concatenate([xe4[..., 1, :], xe4[..., 0, :],
                          xo4[..., 0, :], xo4[..., 1, :]], axis=-1)
    xi = xi.reshape(N, (Ho + 1) * Q, 4 * C)

    # weights, packed to match the channel interleave (c-major per tap)
    wt = jnp.transpose(weight, (2, 3, 1, 0)).astype(cdt)   # (ky, kx, Cin, Cout)
    w_a = jnp.concatenate([wt[0, 1], wt[0, 0], wt[1, 0], wt[1, 1]], axis=0)
    w_b = jnp.concatenate([wt[0, 2], wt[1, 2]], axis=0)
    w_c = jnp.concatenate([wt[2, 1], wt[2, 0]], axis=0)
    w_d = wt[2, 2]
    bb = bias.reshape(1, Co).astype(jnp.float32)

    # ---- generation-aware tiling ------------------------------------------
    cap = _tpu_vmem_capacity()
    budget = int(0.45 * cap)
    target_rows = 2048 if cap >= 96 * 1024 * 1024 else 1024
    TH = _pick_row_tile(N, Ho, Q, C, Co, in_sz, out_sz, budget, target_rows)
    nT = Ho // TH
    vmem_limit = int(0.75 * cap)

    flops = int(2 * N * Ho * Q * 9 * C * Co)
    bytes_accessed = int(xi.size * in_sz + 9 * C * Co * in_sz
                         + N * Ho * Q * Co * out_sz)

    out_m = pl.pallas_call(
        _downsample_kernel,
        out_shape=jax.ShapeDtypeStruct((N, Ho * Q, Co), x_nhwc.dtype),
        grid=(N, nT),
        in_specs=[
            # this row tile
            pl.BlockSpec((None, TH * Q, 4 * C), lambda n, t: (n, t, 0)),
            # halo: first p-row of the next tile (same array, Q-row blocks)
            pl.BlockSpec((None, Q, 4 * C), lambda n, t: (n, (t + 1) * TH, 0)),
            # weights + bias: constant index maps -> resident in VMEM
            pl.BlockSpec((4 * C, Co), lambda n, t: (0, 0)),
            pl.BlockSpec((2 * C, Co), lambda n, t: (0, 0)),
            pl.BlockSpec((2 * C, Co), lambda n, t: (0, 0)),
            pl.BlockSpec((C, Co), lambda n, t: (0, 0)),
            pl.BlockSpec((1, Co), lambda n, t: (0, 0)),
        ],
        out_specs=pl.BlockSpec((None, TH * Q, Co), lambda n, t: (n, t, 0)),
        compiler_params=pltpu.CompilerParams(
            dimension_semantics=("parallel", "parallel"),
            vmem_limit_bytes=vmem_limit,
        ),
        cost_estimate=pl.CostEstimate(flops=flops, transcendentals=0,
                                      bytes_accessed=bytes_accessed),
        interpret=interpret,
    )(xi, xi, w_a, w_b, w_c, w_d, bb)
    # (If profiling shows exposed DMA at small C, add
    #  pipeline_mode=pl.Buffered(3) to the first in_spec.)

    # Drop the lane-alignment padding columns (fuses with downstream layout
    # ops; consumers that can take the Q-padded NHWC slab should skip this).
    return out_m.reshape(N, Ho, Q, Co)[:, :, :Wo, :]


def downsample_forward(x_nchw, weight, bias, *, compute_dtype=None,
                       interpret=False):
    """PyTorch-compatible entry point: NCHW in, NCHW out.

    Callers that can consume NHWC should use `downsample_forward_nhwc`
    directly and skip both full-tensor layout transposes.
    """
    x_nhwc = jnp.transpose(x_nchw, (0, 2, 3, 1))
    out = downsample_forward_nhwc(x_nhwc, weight, bias,
                                  compute_dtype=compute_dtype,
                                  interpret=interpret)
    return jnp.transpose(out, (0, 3, 1, 2))


if __name__ == "__main__":
    key = jax.random.PRNGKey(0)
    k_x, k_w, k_b = jax.random.split(key, 3)

    N, C, H, W = 2, 4, 16, 16
    dim = C

    x = jax.random.normal(k_x, (N, C, H, W), dtype=jnp.float32)
    # deterministic synthetic params (shapes match nn.Conv2d(dim, dim, 3, 2, 1))
    fan_in = dim * 3 * 3
    bound = 1.0 / math.sqrt(fan_in)
    weight = jax.random.uniform(k_w, (dim, dim, 3, 3),
                                minval=-bound, maxval=bound, dtype=jnp.float32)
    bias = jax.random.uniform(k_b, (dim,),
                              minval=-bound, maxval=bound, dtype=jnp.float32)

    out = jax.jit(downsample_forward)(x, weight, bias)
    out = jax.block_until_ready(out)

    # reference: XLA conv (same semantics as torch Conv2d stride=2, pad=1)
    ref = jax.lax.conv_general_dilated(
        x, weight, window_strides=(2, 2), padding=((1, 1), (1, 1)),
        dimension_numbers=("NCHW", "OIHW", "NCHW"),
        precision=jax.lax.Precision.HIGHEST,
    ) + bias.reshape(1, dim, 1, 1)

    assert out.shape == (N, dim, (H + 1) // 2, (W + 1) // 2), out.shape
    # tolerance covers possible reduced-precision MXU matmul modes; structural
    # errors (mis-routed taps) are O(0.1+) and would still be caught.
    assert jnp.allclose(out, ref, atol=2e-2, rtol=2e-2), \
        float(jnp.max(jnp.abs(out - ref)))
    print("KERNEL_OK")
</pallas_src>

<mosaic_0001>
module attributes {stable_mosaic.version = 11 : i64} {
  func.func @_downsample_kernel(%arg0: i32, %arg1: i32, %arg2: memref<1x64x16xf32, #tpu.memory_space<vmem>>, %arg3: memref<1x16x16xf32, #tpu.memory_space<vmem>>, %arg4: memref<16x4xf32, #tpu.memory_space<vmem>>, %arg5: memref<8x4xf32, #tpu.memory_space<vmem>>, %arg6: memref<8x4xf32, #tpu.memory_space<vmem>>, %arg7: memref<4x4xf32, #tpu.memory_space<vmem>>, %arg8: memref<1x4xf32, #tpu.memory_space<vmem>>, %arg9: memref<1x64x4xf32, #tpu.memory_space<vmem>>) attributes {dimension_semantics = [#tpu.dimension_semantics<parallel>, #tpu.dimension_semantics<parallel>], iteration_bounds = array<i64: 2, 2>, scalar_prefetch = 0 : i64, scratch_operands = 0 : i64, tpu.core_type = #tpu.core_type<tc>, window_params = [{transform_indices = @transform_0, window_bounds = array<i64: 1, 64, 16>}, {transform_indices = @transform_1, window_bounds = array<i64: 1, 16, 16>}, {pipeline_mode = #tpu.pipeline_mode<synchronous>, transform_indices = @transform_2, window_bounds = array<i64: 16, 4>}, {pipeline_mode = #tpu.pipeline_mode<synchronous>, transform_indices = @transform_3, window_bounds = array<i64: 8, 4>}, {pipeline_mode = #tpu.pipeline_mode<synchronous>, transform_indices = @transform_4, window_bounds = array<i64: 8, 4>}, {pipeline_mode = #tpu.pipeline_mode<synchronous>, transform_indices = @transform_5, window_bounds = array<i64: 4, 4>}, {pipeline_mode = #tpu.pipeline_mode<synchronous>, transform_indices = @transform_6, window_bounds = array<i64: 1, 4>}, {transform_indices = @transform_7, window_bounds = array<i64: 1, 64, 4>}]} {
    %c0 = arith.constant 0 : index
    %c0_0 = arith.constant 0 : index
    %c0_1 = arith.constant 0 : index
    %0 = vector.load %arg2[%c0, %c0_0, %c0_1] : memref<1x64x16xf32, #tpu.memory_space<vmem>>, vector<1x64x16xf32>
    %1 = vector.shape_cast %0 : vector<1x64x16xf32> to vector<64x16xf32>
    %c0_2 = arith.constant 0 : index
    %c16 = arith.constant 16 : index
    %c0_3 = arith.constant 0 : index
    %2 = vector.load %arg2[%c0_2, %c16, %c0_3] : memref<1x64x16xf32, #tpu.memory_space<vmem>>, vector<1x48x8xf32>
    %3 = vector.shape_cast %2 : vector<1x48x8xf32> to vector<48x8xf32>
    %c0_4 = arith.constant 0 : index
    %c0_5 = arith.constant 0 : index
    %c0_6 = arith.constant 0 : index
    %4 = vector.load %arg3[%c0_4, %c0_5, %c0_6] : memref<1x16x16xf32, #tpu.memory_space<vmem>>, vector<1x16x8xf32>
    %5 = vector.shape_cast %4 : vector<1x16x8xf32> to vector<16x8xf32>
    %6 = tpu.concatenate %3, %5 in 0 : vector<48x8xf32>, vector<16x8xf32> -> vector<64x8xf32>
    %c0_7 = arith.constant 0 : index
    %c0_8 = arith.constant 0 : index
    %7 = vector.load %arg4[%c0_7, %c0_8] : memref<16x4xf32, #tpu.memory_space<vmem>>, vector<16x4xf32>
    %cst = arith.constant dense<0.000000e+00> : vector<64x4xf32>
    %8 = tpu.matmul %1, %7, %cst {dimension_numbers = #tpu.dot_dimension_numbers<[1], [0], [0], [1], [0, 0, 1, 1], [], []>} : vector<64x16xf32>, vector<16x4xf32>, vector<64x4xf32> -> vector<64x4xf32>
    %c0_9 = arith.constant 0 : index
    %c0_10 = arith.constant 0 : index
    %9 = vector.load %arg6[%c0_9, %c0_10] : memref<8x4xf32, #tpu.memory_space<vmem>>, vector<8x4xf32>
    %cst_11 = arith.constant dense<0.000000e+00> : vector<64x4xf32>
    %10 = tpu.matmul %6, %9, %cst_11 {dimension_numbers = #tpu.dot_dimension_numbers<[1], [0], [0], [1], [0, 0, 1, 1], [], []>} : vector<64x8xf32>, vector<8x4xf32>, vector<64x4xf32> -> vector<64x4xf32>
    %11 = arith.addf %8, %10 : vector<64x4xf32>
    %c0_12 = arith.constant 0 : index
    %c0_13 = arith.constant 0 : index
    %12 = vector.load %arg8[%c0_12, %c0_13] : memref<1x4xf32, #tpu.memory_space<vmem>>, vector<1x4xf32>
    %13 = vector.broadcast %12 : vector<1x4xf32> to vector<64x4xf32>
    %14 = arith.addf %11, %13 : vector<64x4xf32>
    %15 = vector.extract_strided_slice %1 {offsets = [0, 4], sizes = [64, 8], strides = [1, 1]} : vector<64x16xf32> to vector<64x8xf32>
    %c0_14 = arith.constant 0 : index
    %c0_15 = arith.constant 0 : index
    %16 = vector.load %arg5[%c0_14, %c0_15] : memref<8x4xf32, #tpu.memory_space<vmem>>, vector<8x4xf32>
    %cst_16 = arith.constant dense<0.000000e+00> : vector<64x4xf32>
    %17 = tpu.matmul %15, %16, %cst_16 {dimension_numbers = #tpu.dot_dimension_numbers<[1], [0], [0], [1], [0, 0, 1, 1], [], []>} : vector<64x8xf32>, vector<8x4xf32>, vector<64x4xf32> -> vector<64x4xf32>
    %18 = vector.extract_strided_slice %6 {offsets = [0, 4], sizes = [64, 4], strides = [1, 1]} : vector<64x8xf32> to vector<64x4xf32>
    %c0_17 = arith.constant 0 : index
    %c0_18 = arith.constant 0 : index
    %19 = vector.load %arg7[%c0_17, %c0_18] : memref<4x4xf32, #tpu.memory_space<vmem>>, vector<4x4xf32>
    %cst_19 = arith.constant dense<0.000000e+00> : vector<64x4xf32>
    %20 = tpu.matmul %18, %19, %cst_19 {dimension_numbers = #tpu.dot_dimension_numbers<[1], [0], [0], [1], [0, 0, 1, 1], [], []>} : vector<64x4xf32>, vector<4x4xf32>, vector<64x4xf32> -> vector<64x4xf32>
    %21 = arith.addf %17, %20 : vector<64x4xf32>
    %c63_i32 = arith.constant 63 : i32
    %22 = tpu.dynamic_rotate %21 by %c63_i32 dim 0 : vector<64x4xf32>, i32 -> vector<64x4xf32>
    %23 = arith.addf %14, %22 : vector<64x4xf32>
    %c0_20 = arith.constant 0 : index
    %c0_21 = arith.constant 0 : index
    %c0_22 = arith.constant 0 : index
    %24 = vector.load %arg9[%c0_20, %c0_21, %c0_22] : memref<1x64x4xf32, #tpu.memory_space<vmem>>, vector<1x64x4xf32>
    %25 = vector.shape_cast %24 : vector<1x64x4xf32> to vector<64x4xf32>
    %26 = vector.shape_cast %23 : vector<64x4xf32> to vector<1x64x4xf32>
    tpu.vector_store %arg9[%c0_20, %c0_21, %c0_22], %26 {strides = array<i32>} : memref<1x64x4xf32, #tpu.memory_space<vmem>>, vector<1x64x4xf32>,
    return
  }
  func.func @transform_0(%arg0: i32, %arg1: i32) -> (i32, i32, i32) {
    %c0_i32 = arith.constant 0 : i32
    %c0_i32_0 = arith.constant 0 : i32
    return %arg0, %arg1, %c0_i32 : i32, i32, i32
  }
  func.func @transform_1(%arg0: i32, %arg1: i32) -> (i32, i32, i32) {
    %c1_i32 = arith.constant 1 : i32
    %0 = arith.addi %arg1, %c1_i32 : i32
    %c4_i32 = arith.constant 4 : i32
    %1 = arith.muli %0, %c4_i32 : i32
    %c0_i32 = arith.constant 0 : i32
    %c0_i32_0 = arith.constant 0 : i32
    return %arg0, %1, %c0_i32 : i32, i32, i32
  }
  func.func @transform_2(%arg0: i32, %arg1: i32) -> (i32, i32) {
    %c0_i32 = arith.constant 0 : i32
    %c0_i32_0 = arith.constant 0 : i32
    %c0_i32_1 = arith.constant 0 : i32
    return %c0_i32, %c0_i32_0 : i32, i32
  }
  func.func @transform_3(%arg0: i32, %arg1: i32) -> (i32, i32) {
    %c0_i32 = arith.constant 0 : i32
    %c0_i32_0 = arith.constant 0 : i32
    %c0_i32_1 = arith.constant 0 : i32
    return %c0_i32, %c0_i32_0 : i32, i32
  }
  func.func @transform_4(%arg0: i32, %arg1: i32) -> (i32, i32) {
    %c0_i32 = arith.constant 0 : i32
    %c0_i32_0 = arith.constant 0 : i32
    %c0_i32_1 = arith.constant 0 : i32
    return %c0_i32, %c0_i32_0 : i32, i32
  }
  func.func @transform_5(%arg0: i32, %arg1: i32) -> (i32, i32) {
    %c0_i32 = arith.constant 0 : i32
    %c0_i32_0 = arith.constant 0 : i32
    %c0_i32_1 = arith.constant 0 : i32
    return %c0_i32, %c0_i32_0 : i32, i32
  }
  func.func @transform_6(%arg0: i32, %arg1: i32) -> (i32, i32) {
    %c0_i32 = arith.constant 0 : i32
    %c0_i32_0 = arith.constant 0 : i32
    %c0_i32_1 = arith.constant 0 : i32
    return %c0_i32, %c0_i32_0 : i32, i32
  }
  func.func @transform_7(%arg0: i32, %arg1: i32) -> (i32, i32, i32) {
    %c0_i32 = arith.constant 0 : i32
    %c0_i32_0 = arith.constant 0 : i32
    return %arg0, %arg1, %c0_i32 : i32, i32, i32
  }
}

</mosaic_0001>

<bundles_post_ra>
// kernel: downsample_forward.1
= control target key start
LH: loop header
LB: loop body
LE: loop exit
PB: predicated region body
PF: predicated region fallthrough
CT: control target
= control target key end

     0   :  { %s1006_s24 = smov 0   ;;  %s1008_s25 = smov 0   ;;  %s1167_s0 = inlined_call_operand.vmem [shape: f32[2,144,16], index: 0, kind: input, shape index: {}, may-alias: {0,1}]   ;;  %s1168_s1 = inlined_call_operand.vmem [shape: f32[2,144,16], index: 1, kind: input, shape index: {}, may-alias: {0,1}]   ;;  %s1169_s2 = inlined_call_operand.vmem [shape: f32[16,4], index: 2, kind: input, shape index: {}]   ;;  %s1170_s3 = inlined_call_operand.vmem [shape: f32[8,4], index: 3, kind: input, shape index: {}]   ;;  %s1171_s4 = inlined_call_operand.vmem [shape: f32[8,4], index: 4, kind: input, shape index: {}]   ;;  %s1172_s5 = inlined_call_operand.vmem [shape: f32[4,4], index: 5, kind: input, shape index: {}]   ;;  %s1173_s6 = inlined_call_operand.vmem [shape: f32[1,4], index: 6, kind: input, shape index: {}]   ;;  %s1174_s7 = inlined_call_operand.vmem [shape: f32[2,128,4], index: 7, kind: output, shape index: {}]  }
   0x1   :  { %s1010_s26 = smov 0   ;;  %s1012_s27 = smov 0  }
   0x2   :  { %s1014_s28 = smov 0  }
   0x3 LB: > { %s26_s29 = sadd.s32 1, %s955_s26  ;;  %s29_s30 = sadd.s32 1, %s959_s27  ;;  %s963_s28 = sphi %s1014_s28, %s17_s28   ;;  %s959_s27 = sphi %s1012_s27, %s1178_s27   ;;  %s955_s26 = sphi %s1010_s26, %s1177_s26   ;;  %s951_s25 = sphi %s1008_s25, %s1176_s25   ;;  %s947_s24 = sphi %s1006_s24, %s1175_s24  }
   0x4   : > { %p27_p0 = scmp.ge.s32.totalorder %s26_s29, 2  ;;  %p829_p1 = scmp.ge.s32.totalorder %s963_s28, 1 }
   0x5   : > { %p291_p2 = scmp.lt.s32.totalorder %s963_s28, 5 }
   0x6   : > { %s1180_s29 = smov (%p27_p0, %s26_s29), 0  ;;  %s1182_s30 = smov (!%p27_p0, %s29_s30), %s959_s27 }
   0x7   : > { %p292_p3 = pnand %p829_p1, %p291_p2  ;;  %p31_p4 = scmp.ge.s32.totalorder %s1182_s30, 2 }
   0x8   : > { %s830_s8 = sshll.u32 (!%p292_p3), %s947_s24, 3  ;;  %p351_p5 = scmp.lt.s32.totalorder (!%p292_p3), %s951_s25, 1 }
   0x9   : > { %s1184_s30 = smov (%p31_p4, %s1182_s30), 0  ;;  %295 = sbr.rel (%p292_p3) target bundleno = 342 (0x156), region = 48 }
   0xa   : > { %p353_p6 = scmp.lt.s32.totalorder (!%p292_p3), %s830_s8, 17  ;;  %p381_p7 = scmp.lt.s32.totalorder (!%p292_p3), %s830_s8, 15 }
   0xb   : > { %s881_s21 = sadd.s32 (!%p292_p3), 8, %s830_s8  ;;  %s965_s22 = smov (!%p292_p3), 124  }
   0xc   : > { %p369_p8 = scmp.lt.s32.totalorder (!%p292_p3), %s881_s21, 17 }
   0xe   : > { %s1186_s25 = smov (!%p351_p5, %s951_s25), 1  ;;  %v540_v0 = vld [vmem:[%s1172_s5] sm:$0xf]  ;;  %vm574_vm0 = vcmask 1043456   ;;  %s1188_s21 = smov (!%p369_p8, %s881_s21), 17  ;;  %v399_v12 = vld [vmem:[%s1169_s2 + $0x8] sm:$0xff]  ;;  %v688_v34 = vlaneseq }
   0xf   : > { %s354_s11 = scalar_select %p353_p6, %s830_s8, 17  ;;  %854 = vmatpush.msk.msra.mxu2 %vm574_vm0, %v540_v0  ;;  %v539_v11 = vld [vmem:[%s1170_s3] sm:$0xff]  ;;  %vm401_vm1 = vcmask 64512   ;;  %500 = vmatpush.msra.mxu1 %v399_v12  ;;  %vm467_vm2 = vcmask 130048   ;;  %vm557_vm3 = vcmask 31744  }
  0x10   : > { %s882_s12 = smul.u32 18, %s1186_s25  ;;  %s836_s13 = sshll.u32 %s1186_s25, 4  ;;  %654 = vmatpush.msra.mxu3 %v539_v11  ;;  %v400_v13 = vld [vmem:[%s1171_s4] sm:$0xff]  ;;  %v1091_v35 = vshrl.u32 %v688_v34, 7 }
  0x11   : > { %s382_s14 = scalar_select %p381_p7, %s830_s8, 15  ;;  %v398_v14 = vld [vmem:[%s1169_s2] sm:$0xff]  ;;  %441 = vmatpush.msra.mxu0 %v400_v13 }
  0x12   : > { %s356_s15 = sadd.s32 %s882_s12, %s354_s11  ;;  %s372_s23 = sadd.s32 %s882_s12, %s1188_s21  ;;  %501 = vmatpush.msra.mxu1 %v398_v14  ;;  %v1098_v38 = vld [vmem:[%s1173_s6] ss:$0 sm:$0xff]  ;;  %vm690_vm4 = vcmp.lt.s32.totalorder %v1091_v35, 7 }
  0x13   : > { %s831_s16 = sshll.u32 %s356_s15, 3  ;;  %s1039_s17 = sadd.s32 %s836_s13, %s382_s14 }
  0x14   : > { %s358_s20 = scalar_lea.vmem %s1167_s0, %s831_s16  ;;  %s834_s24 = sshll.u32 %s372_s23, 3 }
  0x15   : > { %v390_v1 = vld [vmem:[%s358_s20 + $0x10] sm:$0xff]  ;;  %v391_v2 = vld [vmem:[%s358_s20 + $0x18] sm:$0xff]  ;;  %v392_v3 = vld [vmem:[%s358_s20 + $0x20] sm:$0xff]  ;;  %s374_s8 = scalar_lea.vmem %s1168_s1, %s834_s24  ;;  %s837_s21 = sshll.u32 %s1039_s17, 3 }
  0x16   : > { %541 = vrot.lane.b32.xlu0 %v390_v1, %s965_s22  ;;  %543 = vrot.lane.b32.xlu1 %v391_v2, %s965_s22  ;;  %v388_v4 = vld [vmem:[%s358_s20] sm:$0xff]  ;;  %v389_v5 = vld [vmem:[%s358_s20 + $0x8] sm:$0xff]  ;;  %s1107_s24 = scalar_lea.vmem %s1174_s7, %s837_s21 }
  0x17   : > { %545 = vrot.lane.b32.xlu2 %v392_v3, %s965_s22  ;;  %v393_v6 = vld [vmem:[%s358_s20 + $0x28] sm:$0xff]  ;;  %v394_v7 = vld [vmem:[%s358_s20 + $0x30] sm:$0xff]  ;;  %v395_v8 = vld [vmem:[%s358_s20 + $0x38] sm:$0xff]  ;;  %838 = vmatmul.msk.f32.vlgmr.msra.gmra.mxu0 %vm401_vm1, %v390_v1 }
  0x18   : > { %v396_v9 = vld [vmem:[%s374_s8] sm:$0xff]  ;;  %v397_v10 = vld [vmem:[%s374_s8 + $0x8] sm:$0xff]  ;;  %846 = vmatmul.msk.f32.vlgmr.msra.gmra.mxu1 %vm467_vm2, %v388_v4 }
  0x1e   : > { %619 = vrot.lane.b32.xlu0 %v388_v4, %s965_s22  ;;  %621 = vrot.lane.b32.xlu1 %v389_v5, %s965_s22 }
  0x1f   : > { %547 = vrot.lane.b32.xlu2 %v393_v6, %s965_s22  ;;  %839 = vmatmul.msk.f32.gmra.mxu0 %vm401_vm1, %v391_v2 }
  0x20   : > { %847 = vmatmul.msk.f32.gmra.mxu1 %vm467_vm2, %v389_v5 }
  0x26   : > { %549 = vrot.lane.b32.xlu0 %v394_v7, %s965_s22  ;;  %551 = vrot.lane.b32.xlu1 %v395_v8, %s965_s22 }
  0x27   : > { %553 = vrot.lane.b32.xlu2 %v396_v9, %s965_s22  ;;  %840 = vmatmul.msk.f32.gmra.mxu0 %vm401_vm1, %v392_v3 }
  0x28   : > { %848 = vmatmul.msk.f32.gmra.mxu1 %vm467_vm2, %v390_v1 }
  0x2e   : > { %555 = vrot.lane.b32.xlu0 %v397_v10, %s965_s22 }
  0x2f   : > { %841 = vmatmul.msk.f32.gmra.mxu0 %vm401_vm1, %v393_v6 }
  0x30   : > { %849 = vmatmul.msk.f32.gmra.mxu1 %vm467_vm2, %v391_v2 }
  0x37   : > { %842 = vmatmul.msk.f32.gmra.mxu0 %vm401_vm1, %v394_v7 }
  0x38   : > { %850 = vmatmul.msk.f32.gmra.mxu1 %vm467_vm2, %v392_v3 }
  0x3f   : > { %843 = vmatmul.msk.f32.gmra.mxu0 %vm401_vm1, %v395_v8 }
  0x40   : > { %851 = vmatmul.msk.f32.gmra.mxu1 %vm467_vm2, %v393_v6 }
  0x47   : > { %844 = vmatmul.msk.f32.gmra.mxu0 %vm401_vm1, %v396_v9 }
  0x48   : > { %852 = vmatmul.msk.f32.gmra.mxu1 %vm467_vm2, %v394_v7 }
  0x4f   : > { %845 = vmatmul.msk.f32.gmra.mxu0 %vm401_vm1, %v397_v10 }
  0x50   : > { %853 = vmatmul.msk.f32.gmra.mxu1 %vm467_vm2, %v395_v8 }
  0x71   : > { %v546_v18 = vpop.permute.xlu2 %545 }
  0x79   : > { %v548_v20 = vpop.permute.xlu2 %547 }
  0x81   : > { %v554_v23 = vpop.permute.xlu2 %553 }
  0x88   : > { %v542_v15 = vpop.permute.xlu0 %541  ;;  %v544_v16 = vpop.permute.xlu1 %543 }
  0x89   : > { %855 = vmatmul.msk.f32.vlgmr.msra.gmra.mxu2 %vm557_vm3, %v542_v15 }
  0x90   : > { %v620_v17 = vpop.permute.xlu0 %619  ;;  %v622_v19 = vpop.permute.xlu1 %621 }
  0x91   : > { %856 = vmatmul.msk.f32.gmra.mxu2 %vm557_vm3, %v544_v16  ;;  %863 = vmatmul.msk.f32.vlgmr.msra.gmra.mxu3 %vm401_vm1, %v620_v17 }
  0x94   : > { %v443_v25 = vpop.f32.mrf.mxu0 }
  0x95   : > { %v503_v26 = vpop.f32.mrf.mxu1 }
  0x96   : > { %v504_v37 = vadd.f32 %v503_v26, %v443_v25 }
  0x98   : > { %v550_v21 = vpop.permute.xlu0 %549  ;;  %v552_v22 = vpop.permute.xlu1 %551  ;;  %v531_v46 = vadd.f32 %v1098_v38, %v504_v37 }
  0x99   : > { %864 = vmatmul.msk.f32.gmra.mxu3 %vm401_vm1, %v622_v19  ;;  %857 = vmatmul.msk.f32.gmra.mxu2 %vm557_vm3, %v546_v18 }
  0x9c   : > { %v446_v27 = vpop.f32.mrf.mxu0 }
  0x9d   : > { %v506_v28 = vpop.f32.mrf.mxu1 }
  0x9e   : > { %v507_v49 = vadd.f32 %v506_v28, %v446_v27 }
  0xa0   : > { %v556_v24 = vpop.permute.xlu0 %555  ;;  %v532_v54 = vadd.f32 %v1098_v38, %v507_v49 }
  0xa1   : > { %865 = vmatmul.msk.f32.gmra.mxu3 %vm401_vm1, %v542_v15  ;;  %858 = vmatmul.msk.f32.gmra.mxu2 %vm557_vm3, %v548_v20 }
  0xa4   : > { %v449_v32 = vpop.f32.mrf.mxu0 }
  0xa5   : > { %v509_v33 = vpop.f32.mrf.mxu1 }
  0xa6   : > { %v510_v59 = vadd.f32 %v509_v33, %v449_v32 }
  0xa8   : > { %v533_v0 = vadd.f32 %v1098_v38, %v510_v59 }
  0xa9   : > { %866 = vmatmul.msk.f32.gmra.mxu3 %vm401_vm1, %v544_v16  ;;  %859 = vmatmul.msk.f32.gmra.mxu2 %vm557_vm3, %v550_v21 }
  0xac   : > { %v452_v44 = vpop.f32.mrf.mxu0 }
  0xad   : > { %v512_v45 = vpop.f32.mrf.mxu1 }
  0xae   : > { %v513_v5 = vadd.f32 %v512_v45, %v452_v44 }
  0xb0   : > { %v534_v10 = vadd.f32 %v1098_v38, %v513_v5 }
  0xb1   : > { %867 = vmatmul.msk.f32.gmra.mxu3 %vm401_vm1, %v546_v18  ;;  %860 = vmatmul.msk.f32.gmra.mxu2 %vm557_vm3, %v552_v22 }
  0xb4   : > { %v455_v56 = vpop.f32.mrf.mxu0 }
  0xb5   : > { %v515_v57 = vpop.f32.mrf.mxu1 }
  0xb6   : > { %v516_v13 = vadd.f32 %v515_v57, %v455_v56 }
  0xb8   : > { %v535_v19 = vadd.f32 %v1098_v38, %v516_v13 }
  0xb9   : > { %868 = vmatmul.msk.f32.gmra.mxu3 %vm401_vm1, %v548_v20  ;;  %861 = vmatmul.msk.f32.gmra.mxu2 %vm557_vm3, %v554_v23 }
  0xbc   : > { %v458_v3 = vpop.f32.mrf.mxu0 }
  0xbd   : > { %v518_v4 = vpop.f32.mrf.mxu1 }
  0xbe   : > { %v519_v23 = vadd.f32 %v518_v4, %v458_v3 }
  0xc1   : > { %869 = vmatmul.msk.f32.gmra.mxu3 %vm401_vm1, %v550_v21  ;;  %862 = vmatmul.msk.f32.gmra.mxu2 %vm557_vm3, %v556_v24 }
  0xc4   : > { %v461_v16 = vpop.f32.mrf.mxu0 }
  0xc5   : > { %v521_v17 = vpop.f32.mrf.mxu1 }
  0xc6   : > { %v522_v34 = vadd.f32 %v521_v17, %v461_v16 }
  0xc9   : > { %870 = vmatmul.msk.f32.gmra.mxu3 %vm401_vm1, %v552_v22 }
  0xcc   : > { %v464_v27 = vpop.f32.mrf.mxu0 }
  0xcd   : > { %v524_v28 = vpop.f32.mrf.mxu1 }
  0xce   : > { %v525_v33 = vadd.f32 %v524_v28, %v464_v27 }
 0x10c   : > { %v595_v29 = vpop.f32.mrf.mxu2 }
 0x114   : > { %v598_v30 = vpop.f32.mrf.mxu2  ;;  %v656_v31 = vpop.f32.mrf.mxu3 }
 0x115   : > { %v1093_v36 = vadd.f32 %v656_v31, %v595_v29  ;;  %v536_v29 = vadd.f32 %v1098_v38, %v519_v23 }
 0x117   : > { %v680_v42 = vrot.slane %v1093_v36, 1 }
 0x11c   : > { %v659_v39 = vpop.f32.mrf.mxu3  ;;  %v601_v40 = vpop.f32.mrf.mxu2 }
 0x11d   : > { %v660_v41 = vadd.f32 %v659_v39, %v598_v30 }
 0x11f   : > { %v681_v43 = vrot.slane %v660_v41, 1 }
 0x121   : > { %v697_v47 = vsel %vm690_vm4, %v680_v42, %v681_v43 }
 0x122   : > { %v699_v48 = vadd.f32 %v697_v47, %v531_v46 }
 0x124   : > { %707 = vst.msk [vmem:[%s1107_s24] sm:$0xff] %vm557_vm3, %v699_v48  ;;  %v662_v50 = vpop.f32.mrf.mxu3  ;;  %v604_v51 = vpop.f32.mrf.mxu2 }
 0x125   : > { %v663_v52 = vadd.f32 %v662_v50, %v601_v40  ;;  %v538_v40 = vadd.f32 %v1098_v38, %v525_v33 }
 0x127   : > { %v682_v53 = vrot.slane %v663_v52, 1 }
 0x129   : > { %v696_v55 = vsel %vm690_vm4, %v681_v43, %v682_v53  ;;  %v537_v43 = vadd.f32 %v1098_v38, %v522_v34 }
 0x12a   : > { %v700_v58 = vadd.f32 %v696_v55, %v532_v54 }
 0x12c   : > { %708 = vst.msk [vmem:[%s1107_s24 + $0x8] sm:$0xff] %vm557_vm3, %v700_v58  ;;  %v665_v60 = vpop.f32.mrf.mxu3  ;;  %v607_v61 = vpop.f32.mrf.mxu2 }
 0x12d   : > { %v666_v62 = vadd.f32 %v665_v60, %v604_v51 }
 0x12f   : > { %v683_v63 = vrot.slane %v666_v62, 1 }
 0x131   : > { %v695_v1 = vsel %vm690_vm4, %v682_v53, %v683_v63 }
 0x132   : > { %v701_v2 = vadd.f32 %v695_v1, %v533_v0 }
 0x134   : > { %709 = vst.msk [vmem:[%s1107_s24 + $0x10] sm:$0xff] %vm557_vm3, %v701_v2  ;;  %v668_v6 = vpop.f32.mrf.mxu3  ;;  %v610_v8 = vpop.f32.mrf.mxu2 }
 0x135   : > { %v669_v7 = vadd.f32 %v668_v6, %v607_v61 }
 0x137   : > { %v684_v9 = vrot.slane %v669_v7, 1 }
 0x139   : > { %v694_v11 = vsel %vm690_vm4, %v683_v63, %v684_v9 }
 0x13a   : > { %v702_v12 = vadd.f32 %v694_v11, %v534_v10 }
 0x13c   : > { %710 = vst.msk [vmem:[%s1107_s24 + $0x18] sm:$0xff] %vm557_vm3, %v702_v12  ;;  %v671_v14 = vpop.f32.mrf.mxu3  ;;  %v613_v20 = vpop.f32.mrf.mxu2 }
 0x13d   : > { %v672_v15 = vadd.f32 %v671_v14, %v610_v8 }
 0x13f   : > { %v685_v18 = vrot.slane %v672_v15, 1 }
 0x141   : > { %v693_v21 = vsel %vm690_vm4, %v684_v9, %v685_v18 }
 0x142   : > { %v703_v22 = vadd.f32 %v693_v21, %v535_v19 }
 0x144   : > { %711 = vst.msk [vmem:[%s1107_s24 + $0x20] sm:$0xff] %vm557_vm3, %v703_v22  ;;  %v674_v24 = vpop.f32.mrf.mxu3  ;;  %v616_v32 = vpop.f32.mrf.mxu2 }
 0x145   : > { %v675_v25 = vadd.f32 %v674_v24, %v613_v20 }
 0x147   : > { %v686_v26 = vrot.slane %v675_v25, 1 }
 0x149   : > { %v692_v30 = vsel %vm690_vm4, %v685_v18, %v686_v26 }
 0x14a   : > { %v704_v31 = vadd.f32 %v692_v30, %v536_v29 }
 0x14c   : > { %712 = vst.msk [vmem:[%s1107_s24 + $0x28] sm:$0xff] %vm557_vm3, %v704_v31  ;;  %v677_v37 = vpop.f32.mrf.mxu3 }
 0x14d   : > { %v678_v39 = vadd.f32 %v677_v37, %v616_v32 }
 0x14f   : > { %v687_v41 = vrot.slane %v678_v39, 1 }
 0x151   : > { %v691_v44 = vsel %vm690_vm4, %v686_v26, %v687_v41  ;;  %v698_v45 = vsel %vm690_vm4, %v687_v41, %v680_v42 }
 0x152   : > { %v705_v46 = vadd.f32 %v691_v44, %v537_v43  ;;  %v706_v47 = vadd.f32 %v698_v45, %v538_v40 }
 0x154   : > { %713 = vst.msk [vmem:[%s1107_s24 + $0x30] sm:$0xff] %vm557_vm3, %v705_v46 }
 0x155   : > { %714 = vst.msk [vmem:[%s1107_s24 + $0x38] sm:$0xff] %vm557_vm3, %v706_v47 }
 0x156 PF: > { %s17_s28 = sadd.s32 1, %s963_s28   ;;  %s1175_s24 = smov %s955_s26 }
 0x157   : > { %p14_p9 = scmp.ge.s32.totalorder %s17_s28, 6   ;;  %s1176_s25 = smov %s959_s27 }
 0x158   : > { %s1177_s26 = smov %s1180_s29  ;;  %s1178_s27 = smov %s1184_s30 }
 0x159   :  { %16 = sbr.rel (!%p14_p9) target bundleno = 3 (0x3), region = 81 }

</bundles_post_ra>
